<compile_context>
chip_gen: v7x
topology: tpu7x:2x2x1
jax: 0.10.0
libtpu: 0.0.40
codegen_flags: <defaults>
</compile_context>

<pallas_src>
import functools

import jax
import jax.numpy as jnp
from jax.experimental import pallas as pl
from jax.experimental.pallas import tpu as pltpu

_LANES = 128


def _sublane_multiple(*dtypes):
    """Minimum legal sublane tile for the narrowest dtype involved."""
    min_item = min(jnp.dtype(d).itemsize for d in dtypes)
    return max(8, 32 // max(1, min_item))


def _iou_kernel(s_ref, t_ref, loss_ref, iou_ref, *, mode):
    """Elementwise IoU / GIoU loss on one (1, 4, tile_rows, 128) block."""
    f32 = jnp.float32
    # Channel-wise loads; each is a lane-dense (tile_rows, 128) slab.
    s_l = s_ref[0, 0].astype(f32)
    s_t = s_ref[0, 1].astype(f32)
    s_r = s_ref[0, 2].astype(f32)
    s_b = s_ref[0, 3].astype(f32)
    t_l = t_ref[0, 0].astype(f32)
    t_t = t_ref[0, 1].astype(f32)
    t_r = t_ref[0, 2].astype(f32)
    t_b = t_ref[0, 3].astype(f32)

    source_area = (s_l + s_r) * (s_t + s_b)
    target_area = (t_l + t_r) * (t_t + t_b)

    w_intersect = jnp.minimum(s_l, t_l) + jnp.minimum(s_r, t_r)
    h_intersect = jnp.minimum(s_b, t_b) + jnp.minimum(s_t, t_t)
    area_intersect = w_intersect * h_intersect
    area_union = target_area + source_area - area_intersect

    ious = (area_intersect + 1.0) / (area_union + 1.0)

    if mode == "iou":
        losses = -jnp.log(ious)
    elif mode == "linear_iou":
        losses = 1.0 - ious
    elif mode == "giou":
        g_w_intersect = jnp.maximum(s_l, t_l) + jnp.maximum(s_r, t_r)
        g_h_intersect = jnp.maximum(s_b, t_b) + jnp.maximum(s_t, t_t)
        ac_union = g_w_intersect * g_h_intersect + 1e-7
        gious = ious - (ac_union - area_union) / ac_union
        losses = 1.0 - gious
    else:
        raise NotImplementedError(mode)

    loss_ref[0] = losses.astype(loss_ref.dtype)
    iou_ref[0] = ious.astype(iou_ref.dtype)


def iou_loss(source, target, mode="iou", *, tile_rows=2048):
    """JAX/Pallas equivalent of IoULoss(mode).forward(source, target).

    source/target: (N, 4, *spatial) with channels = (left, top, right, bottom).
    Returns (losses, ious), each of shape (N, *spatial).
    """
    # TODO(synk): the unused `weight` argument of the PyTorch forward is omitted.
    if mode not in ("iou", "linear_iou", "giou"):
        raise NotImplementedError(mode)
    assert source.shape == target.shape
    assert source.ndim >= 2 and source.shape[1] == 4, "dim 1 must carry (l,t,r,b)"
    out_dtype = jnp.promote_types(source.dtype, target.dtype)

    n = source.shape[0]
    tail = source.shape[2:]
    out_logical = (n,) + tail
    p = 1
    for d in tail:
        p *= d

    if n == 0 or p == 0:
        z = jnp.zeros(out_logical, out_dtype)
        return z, z

    # Free reshape to (N, 4, P); pad P to a multiple of 128 lanes only if needed.
    s = source.reshape(n, 4, p)
    t = target.reshape(n, 4, p)
    pad = (-p) % _LANES
    if pad:
        # 1 in every channel gives iou == 1, loss == 0 (no log(0)/div-by-zero);
        # padded lanes are sliced off after the call.
        s = jnp.pad(s, ((0, 0), (0, 0), (0, pad)), constant_values=1)
        t = jnp.pad(t, ((0, 0), (0, 0), (0, pad)), constant_values=1)
    rows = (p + pad) // _LANES
    s = s.reshape(n, 4, rows, _LANES)
    t = t.reshape(n, 4, rows, _LANES)

    # Tile selection: dtype-aware sublane rounding, ragged last block allowed.
    mult = _sublane_multiple(source.dtype, target.dtype, out_dtype)
    tr = max(mult, (int(tile_rows) // mult) * mult)
    if n == 1 and rows > mult:
        # Guarantee >= 2 row blocks so both v7x TensorCores get work.
        half = -(-rows // 2)
        half = -(-half // mult) * mult
        tr = min(tr, half)
    if tr >= rows:
        tr = rows          # single full-extent block (legal for any row count)
        n_blocks = 1
    else:
        n_blocks = pl.cdiv(rows, tr)   # last block may be ragged (masked writes)

    # VMEM budget: 2 inputs + 2 outputs, double buffered, plus headroom.
    block_pos = tr * _LANES
    itm_s = jnp.dtype(source.dtype).itemsize
    itm_t = jnp.dtype(target.dtype).itemsize
    itm_o = jnp.dtype(out_dtype).itemsize
    vmem_bytes = 2 * 4 * block_pos * (itm_s + itm_t) + 2 * 2 * block_pos * itm_o
    vmem_limit = int(min(max(vmem_bytes * 3 // 2 + (4 << 20), 16 << 20), 48 << 20))

    in_spec = pl.BlockSpec((1, 4, tr, _LANES), lambda b, i: (b, 0, i, 0))
    out_spec = pl.BlockSpec((1, tr, _LANES), lambda b, i: (b, i, 0))
    out_sds = jax.ShapeDtypeStruct((n, rows, _LANES), out_dtype)

    losses3, ious3 = pl.pallas_call(
        functools.partial(_iou_kernel, mode=mode),
        out_shape=(out_sds, out_sds),
        grid=(n, n_blocks),
        in_specs=[in_spec, in_spec],
        out_specs=(out_spec, out_spec),
        compiler_params=pltpu.CompilerParams(
            dimension_semantics=("parallel", "parallel"),
            vmem_limit_bytes=vmem_limit,
        ),
    )(s, t)

    losses = losses3.reshape(n, rows * _LANES)
    ious = ious3.reshape(n, rows * _LANES)
    if pad:
        losses = losses[:, :p]
        ious = ious[:, :p]
    return losses.reshape(out_logical), ious.reshape(out_logical)


def _reference(source, target, mode="iou"):
    """Pure-JAX transcription of IoULoss.forward (computed in f32)."""
    out_dtype = jnp.promote_types(source.dtype, target.dtype)
    src = source.astype(jnp.float32)
    tgt = target.astype(jnp.float32)
    s_l, s_t, s_r, s_b = (src[:, i] for i in range(4))
    t_l, t_t, t_r, t_b = (tgt[:, i] for i in range(4))

    source_area = (s_l + s_r) * (s_t + s_b)
    target_area = (t_l + t_r) * (t_t + t_b)
    w_intersect = jnp.minimum(s_l, t_l) + jnp.minimum(s_r, t_r)
    g_w_intersect = jnp.maximum(s_l, t_l) + jnp.maximum(s_r, t_r)
    h_intersect = jnp.minimum(s_b, t_b) + jnp.minimum(s_t, t_t)
    g_h_intersect = jnp.maximum(s_b, t_b) + jnp.maximum(s_t, t_t)
    ac_union = g_w_intersect * g_h_intersect + 1e-7
    area_intersect = w_intersect * h_intersect
    area_union = target_area + source_area - area_intersect
    ious = (area_intersect + 1.0) / (area_union + 1.0)
    gious = ious - (ac_union - area_union) / ac_union
    if mode == "iou":
        losses = -jnp.log(ious)
    elif mode == "linear_iou":
        losses = 1.0 - ious
    elif mode == "giou":
        losses = 1.0 - gious
    else:
        raise NotImplementedError(mode)
    return losses.astype(out_dtype), ious.astype(out_dtype)


if __name__ == "__main__":
    key = jax.random.PRNGKey(0)
    k1, k2, k3, k4, k5, k6 = jax.random.split(key, 6)

    # NCHW like the module's usage: dim 1 carries (left, top, right, bottom)
    # positive distance-to-border regressions (FCOS-style).
    shape = (2, 4, 16, 16)
    source = jax.random.uniform(k1, shape, jnp.float32, minval=0.1, maxval=8.0)
    target = jax.random.uniform(k2, shape, jnp.float32, minval=0.1, maxval=8.0)

    for mode in ("iou", "linear_iou", "giou"):
        losses, ious = iou_loss(source, target, mode=mode)
        losses = jax.block_until_ready(losses)
        ious = jax.block_until_ready(ious)
        ref_losses, ref_ious = _reference(source, target, mode=mode)
        assert losses.shape == ref_losses.shape, (losses.shape, ref_losses.shape)
        assert jnp.allclose(losses, ref_losses, rtol=1e-5, atol=1e-5), mode
        assert jnp.allclose(ious, ref_ious, rtol=1e-5, atol=1e-5), mode

    # Non-128-aligned spatial extent + single batch (exercises the pad/slice
    # path and the full-extent ragged block).
    shape2 = (1, 4, 15, 11)
    src2 = jax.random.uniform(k3, shape2, jnp.float32, minval=0.1, maxval=8.0)
    tgt2 = jax.random.uniform(k4, shape2, jnp.float32, minval=0.1, maxval=8.0)
    l2, i2 = iou_loss(src2, tgt2, mode="giou")
    l2 = jax.block_until_ready(l2)
    i2 = jax.block_until_ready(i2)
    rl2, ri2 = _reference(src2, tgt2, mode="giou")
    assert l2.shape == rl2.shape
    assert jnp.allclose(l2, rl2, rtol=1e-5, atol=1e-5)
    assert jnp.allclose(i2, ri2, rtol=1e-5, atol=1e-5)

    # bf16 pass-through (halves HBM traffic; in-kernel f32 compute).
    shape3 = (2, 4, 32, 64)
    src3 = jax.random.uniform(k5, shape3, jnp.float32, minval=0.1, maxval=8.0).astype(jnp.bfloat16)
    tgt3 = jax.random.uniform(k6, shape3, jnp.float32, minval=0.1, maxval=8.0).astype(jnp.bfloat16)
    l3, i3 = iou_loss(src3, tgt3, mode="linear_iou")
    l3 = jax.block_until_ready(l3)
    i3 = jax.block_until_ready(i3)
    rl3, ri3 = _reference(src3, tgt3, mode="linear_iou")
    assert l3.dtype == jnp.bfloat16 and l3.shape == rl3.shape
    assert jnp.allclose(l3.astype(jnp.float32), rl3.astype(jnp.float32), rtol=2e-2, atol=2e-2)
    assert jnp.allclose(i3.astype(jnp.float32), ri3.astype(jnp.float32), rtol=2e-2, atol=2e-2)

    print("KERNEL_OK")
</pallas_src>

<mosaic_0001>
module attributes {stable_mosaic.version = 11 : i64} {
  func.func @_iou_kernel(%arg0: i32, %arg1: i32, %arg2: memref<1x4x2x128xf32, #tpu.memory_space<vmem>>, %arg3: memref<1x4x2x128xf32, #tpu.memory_space<vmem>>, %arg4: memref<1x2x128xf32, #tpu.memory_space<vmem>>, %arg5: memref<1x2x128xf32, #tpu.memory_space<vmem>>) attributes {dimension_semantics = [#tpu.dimension_semantics<parallel>, #tpu.dimension_semantics<parallel>], iteration_bounds = array<i64: 2, 1>, scalar_prefetch = 0 : i64, scratch_operands = 0 : i64, tpu.core_type = #tpu.core_type<tc>, window_params = [{transform_indices = @transform_0, window_bounds = array<i64: 1, 4, 2, 128>}, {transform_indices = @transform_1, window_bounds = array<i64: 1, 4, 2, 128>}, {transform_indices = @transform_2, window_bounds = array<i64: 1, 2, 128>}, {transform_indices = @transform_3, window_bounds = array<i64: 1, 2, 128>}]} {
    %c0 = arith.constant 0 : index
    %c0_0 = arith.constant 0 : index
    %c0_1 = arith.constant 0 : index
    %c0_2 = arith.constant 0 : index
    %0 = vector.load %arg2[%c0, %c0_0, %c0_1, %c0_2] : memref<1x4x2x128xf32, #tpu.memory_space<vmem>>, vector<1x1x2x128xf32>
    %1 = vector.shape_cast %0 : vector<1x1x2x128xf32> to vector<2x128xf32>
    %c0_3 = arith.constant 0 : index
    %c1 = arith.constant 1 : index
    %c0_4 = arith.constant 0 : index
    %c0_5 = arith.constant 0 : index
    %2 = vector.load %arg2[%c0_3, %c1, %c0_4, %c0_5] : memref<1x4x2x128xf32, #tpu.memory_space<vmem>>, vector<1x1x2x128xf32>
    %3 = vector.shape_cast %2 : vector<1x1x2x128xf32> to vector<2x128xf32>
    %c0_6 = arith.constant 0 : index
    %c2 = arith.constant 2 : index
    %c0_7 = arith.constant 0 : index
    %c0_8 = arith.constant 0 : index
    %4 = vector.load %arg2[%c0_6, %c2, %c0_7, %c0_8] : memref<1x4x2x128xf32, #tpu.memory_space<vmem>>, vector<1x1x2x128xf32>
    %5 = vector.shape_cast %4 : vector<1x1x2x128xf32> to vector<2x128xf32>
    %c0_9 = arith.constant 0 : index
    %c3 = arith.constant 3 : index
    %c0_10 = arith.constant 0 : index
    %c0_11 = arith.constant 0 : index
    %6 = vector.load %arg2[%c0_9, %c3, %c0_10, %c0_11] : memref<1x4x2x128xf32, #tpu.memory_space<vmem>>, vector<1x1x2x128xf32>
    %7 = vector.shape_cast %6 : vector<1x1x2x128xf32> to vector<2x128xf32>
    %c0_12 = arith.constant 0 : index
    %c0_13 = arith.constant 0 : index
    %c0_14 = arith.constant 0 : index
    %c0_15 = arith.constant 0 : index
    %8 = vector.load %arg3[%c0_12, %c0_13, %c0_14, %c0_15] : memref<1x4x2x128xf32, #tpu.memory_space<vmem>>, vector<1x1x2x128xf32>
    %9 = vector.shape_cast %8 : vector<1x1x2x128xf32> to vector<2x128xf32>
    %c0_16 = arith.constant 0 : index
    %c1_17 = arith.constant 1 : index
    %c0_18 = arith.constant 0 : index
    %c0_19 = arith.constant 0 : index
    %10 = vector.load %arg3[%c0_16, %c1_17, %c0_18, %c0_19] : memref<1x4x2x128xf32, #tpu.memory_space<vmem>>, vector<1x1x2x128xf32>
    %11 = vector.shape_cast %10 : vector<1x1x2x128xf32> to vector<2x128xf32>
    %c0_20 = arith.constant 0 : index
    %c2_21 = arith.constant 2 : index
    %c0_22 = arith.constant 0 : index
    %c0_23 = arith.constant 0 : index
    %12 = vector.load %arg3[%c0_20, %c2_21, %c0_22, %c0_23] : memref<1x4x2x128xf32, #tpu.memory_space<vmem>>, vector<1x1x2x128xf32>
    %13 = vector.shape_cast %12 : vector<1x1x2x128xf32> to vector<2x128xf32>
    %c0_24 = arith.constant 0 : index
    %c3_25 = arith.constant 3 : index
    %c0_26 = arith.constant 0 : index
    %c0_27 = arith.constant 0 : index
    %14 = vector.load %arg3[%c0_24, %c3_25, %c0_26, %c0_27] : memref<1x4x2x128xf32, #tpu.memory_space<vmem>>, vector<1x1x2x128xf32>
    %15 = vector.shape_cast %14 : vector<1x1x2x128xf32> to vector<2x128xf32>
    %16 = arith.addf %1, %5 : vector<2x128xf32>
    %17 = arith.addf %3, %7 : vector<2x128xf32>
    %18 = arith.mulf %16, %17 : vector<2x128xf32>
    %19 = arith.addf %9, %13 : vector<2x128xf32>
    %20 = arith.addf %11, %15 : vector<2x128xf32>
    %21 = arith.mulf %19, %20 : vector<2x128xf32>
    %22 = arith.minimumf %1, %9 : vector<2x128xf32>
    %23 = arith.minimumf %5, %13 : vector<2x128xf32>
    %24 = arith.addf %22, %23 : vector<2x128xf32>
    %25 = arith.minimumf %7, %15 : vector<2x128xf32>
    %26 = arith.minimumf %3, %11 : vector<2x128xf32>
    %27 = arith.addf %25, %26 : vector<2x128xf32>
    %28 = arith.mulf %24, %27 : vector<2x128xf32>
    %29 = arith.addf %21, %18 : vector<2x128xf32>
    %30 = arith.subf %29, %28 : vector<2x128xf32>
    %cst = arith.constant 1.000000e+00 : f32
    %31 = vector.broadcast %cst : f32 to vector<2x128xf32>
    %32 = arith.addf %28, %31 : vector<2x128xf32>
    %cst_28 = arith.constant 1.000000e+00 : f32
    %33 = vector.broadcast %cst_28 : f32 to vector<2x128xf32>
    %34 = arith.addf %30, %33 : vector<2x128xf32>
    %35 = arith.divf %32, %34 : vector<2x128xf32>
    %36 = math.log %35 : vector<2x128xf32>
    %cst_29 = arith.constant 0.000000e+00 : f32
    %37 = vector.broadcast %cst_29 : f32 to vector<2x128xf32>
    %38 = arith.subf %37, %36 : vector<2x128xf32>
    %c0_30 = arith.constant 0 : index
    %c0_31 = arith.constant 0 : index
    %c0_32 = arith.constant 0 : index
    %39 = vector.load %arg4[%c0_30, %c0_31, %c0_32] : memref<1x2x128xf32, #tpu.memory_space<vmem>>, vector<1x2x128xf32>
    %40 = vector.shape_cast %39 : vector<1x2x128xf32> to vector<2x128xf32>
    %41 = vector.shape_cast %38 : vector<2x128xf32> to vector<1x2x128xf32>
    tpu.vector_store %arg4[%c0_30, %c0_31, %c0_32], %41 {strides = array<i32>} : memref<1x2x128xf32, #tpu.memory_space<vmem>>, vector<1x2x128xf32>,
    %c0_33 = arith.constant 0 : index
    %c0_34 = arith.constant 0 : index
    %c0_35 = arith.constant 0 : index
    %42 = vector.load %arg5[%c0_33, %c0_34, %c0_35] : memref<1x2x128xf32, #tpu.memory_space<vmem>>, vector<1x2x128xf32>
    %43 = vector.shape_cast %42 : vector<1x2x128xf32> to vector<2x128xf32>
    %44 = vector.shape_cast %35 : vector<2x128xf32> to vector<1x2x128xf32>
    tpu.vector_store %arg5[%c0_33, %c0_34, %c0_35], %44 {strides = array<i32>} : memref<1x2x128xf32, #tpu.memory_space<vmem>>, vector<1x2x128xf32>,
    return
  }
  func.func @transform_0(%arg0: i32, %arg1: i32) -> (i32, i32, i32, i32) {
    %c0_i32 = arith.constant 0 : i32
    %c0_i32_0 = arith.constant 0 : i32
    %c0_i32_1 = arith.constant 0 : i32
    return %arg0, %c0_i32, %arg1, %c0_i32_0 : i32, i32, i32, i32
  }
  func.func @transform_1(%arg0: i32, %arg1: i32) -> (i32, i32, i32, i32) {
    %c0_i32 = arith.constant 0 : i32
    %c0_i32_0 = arith.constant 0 : i32
    %c0_i32_1 = arith.constant 0 : i32
    return %arg0, %c0_i32, %arg1, %c0_i32_0 : i32, i32, i32, i32
  }
  func.func @transform_2(%arg0: i32, %arg1: i32) -> (i32, i32, i32) {
    %c0_i32 = arith.constant 0 : i32
    %c0_i32_0 = arith.constant 0 : i32
    return %arg0, %arg1, %c0_i32 : i32, i32, i32
  }
  func.func @transform_3(%arg0: i32, %arg1: i32) -> (i32, i32, i32) {
    %c0_i32 = arith.constant 0 : i32
    %c0_i32_0 = arith.constant 0 : i32
    return %arg0, %arg1, %c0_i32 : i32, i32, i32
  }
}

</mosaic_0001>

<bundles_post_ra>
// kernel: tpu_custom_call.1
= control target key start
LH: loop header
LB: loop body
LE: loop exit
PB: predicated region body
PF: predicated region fallthrough
CT: control target
= control target key end

     0   :  { %9 = vsyncpa [#allocation3], 0  ;;  %s1058_s0 = inlined_call_operand.hbm [shape: f32[2,4,2,128], index: 0, kind: input, shape index: {}]   ;;  %s1059_s1 = inlined_call_operand.hbm [shape: f32[2,4,2,128], index: 1, kind: input, shape index: {}]   ;;  %s1060_s2 = inlined_call_operand.hbm [shape: f32[2,2,128], index: 2, kind: output, shape index: {0}]   ;;  %s1061_s3 = inlined_call_operand.hbm [shape: f32[2,2,128], index: 3, kind: output, shape index: {1}]  }
   0x1   :  { %11 = vsyncpa [#allocation3 + $0x1], 0 }
   0x2   :  { %12 = vsyncpa [#allocation6], 0 }
   0x3   :  { %14 = vsyncpa [#allocation6 + $0x1], 0 }
   0x4   :  { %15 = vsyncpa [#allocation4], 0 }
   0x5   :  { %17 = vsyncpa [#allocation4 + $0x1], 0 }
   0x6   :  { %18 = vsyncpa [#allocation9], 0 }
   0x7   :  { %20 = vsyncpa [#allocation9 + $0x1], 0  ;;  %s786_s12 = smov 0   ;;  %s788_s13 = smov 0  }
   0x8   :  { %s790_s14 = smov 0   ;;  %s792_s15 = smov 0  }
   0x9   :  { %s794_s16 = smov 0   ;;  %s796_s17 = smov 0  }
   0xa LB: > { %s473_s18 = sadd.s32 4294967295, %s758_s17   ;;  %s474_s19 = sadd.s32 4294967294, %s758_s17   ;;  %s758_s17 = sphi %s796_s17, %s26_s17   ;;  %s754_s16 = sphi %s794_s16, %s1079_s16   ;;  %s750_s15 = sphi %s792_s15, %s1078_s15   ;;  %s746_s14 = sphi %s790_s14, %s1077_s14   ;;  %s742_s13 = sphi %s788_s13, %s1076_s13   ;;  %s738_s12 = sphi %s786_s12, %s1075_s12  }
   0xb   : > { %s38_s20 = sadd.s32 1, %s754_s16  ;;  %s47_s21 = sadd.s32 1, %s746_s14 }
   0xc   : > { %p40_p0 = scmp.ge.s32.totalorder %s38_s20, 2  ;;  %p54_p1 = scmp.ne.s32.totalorder %s746_s14, %s742_s13 }
   0xd   : > { %p55_p2 = scmp.eq.s32.totalorder %s758_s17, 0  ;;  %p60_p3 = scmp.ne.s32.totalorder %s742_s13, %s738_s12 }
   0xe   : > { %s1081_s20 = smov (%p40_p0, %s38_s20), 0  ;;  %p61_p5 = scmp.eq.s32.totalorder %s473_s18, 0 }
   0xf   : > { %p827_p4 = por %p55_p2, %p54_p1  ;;  %s42_s23 = ssub.s32 %s754_s16, %s1081_s20 }
  0x10   : > { %p114_p6 = scmp.eq.s32.totalorder %s473_s18, 1  ;;  %p45_p7 = scmp.eq.s32.totalorder %s42_s23, 0 }
  0x11   : > { %p833_p8 = por %p61_p5, %p60_p3  ;;  %p120_p10 = scmp.eq.s32.totalorder %s474_s19, 1 }
  0x12   : > { %p837_p9 = por %p114_p6, %p54_p1  ;;  %p524_p13 = scmp.lt.s32.totalorder %s758_s17, 2 }
  0x13   : > { %s1065_s24 = scalar_select %p833_p8, 1, 0 }
  0x14   : > { %s1066_s25 = scalar_select %p837_p9, 1, 0 }
  0x15   : > { %s842_s26 = scalar_select %p45_p7, %s746_s14, %s47_s21  }
  0x16   : > { %p844_p11 = por %p120_p10, %p60_p3  ;;  %s851_s28 = sand.u32 1, %s746_s14  }
  0x17   : > { %s477_s29 = sshll.u32 %s851_s28, 3  ;;  %s500_s30 = sshll.u32 %s754_s16, 7 }
  0x18   : > { %s1067_s27 = scalar_select %p844_p11, 1, 0 }
  0x19   : > { %s860_s6 = scalar_lea.hbm %s1058_s0, %s500_s30  ;;  %s172_s7 = scalar_lea.vmem [#allocation2], %s477_s29 }
  0x1a   : > { %s180_s8 = sshll.u32 %s172_s7, 4  ;;  %p868_p0 = pnand %p524_p13, %p827_p4  ;;  %s864_s8 = int_to_ptr.vmem [resolvable:$true] %s180_s8 }
  0x1b   : > { %s169_s10 = scalar_lea.sflag [#allocation3], %s851_s28  ;;  %s580_s11 = scalar_lea.hbm %s860_s6, 128 }
  0x1c   : > { %p581_p2 = scmp.ne.s32.totalorder %s860_s6, %s580_s11  ;;  %p582_p3 = pneg %p868_p0 }
  0x1d   : > { %s585_s21 = scalar_lea.hbm %s1058_s0, 256  ;;  %p586_p4 = scmp.lt.u32.totalorder %s860_s6, %s1058_s0 }
  0x1e   : > { %p583_p5 = pnand %p582_p3, %p581_p2  ;;  %p587_p7 = scmp.lt.u32.totalorder %s585_s21, %s580_s11 }
  0x1f   : > { %p589_p13 = scmp.lt.u32.totalorder %s580_s11, %s860_s6 }
  0x20   : > { %p584_p6 = pneg %p583_p5  ;;  %p588_p10 = por %p587_p7, %p586_p4 }
  0x22   : > { %p590_p12 = por %p589_p13, %p588_p10 }
  0x24   : > { %p591_p1 = pnand %p590_p12, %p584_p6 }
  0x26   : > { %594 = shalt.err (!%p591_p1)
}
  0x27   : > { %s595_s4 = scalar_lea.vmem %s864_s8, 128  ;;  %s760_s5 = smov [#allocation2]  }
  0x28   : > { %p596_p2 = scmp.ne.s32.totalorder %s864_s8, %s595_s4  ;;  %s600_s7 = sshll.u32 %s760_s5, 4  ;;  %s601_s7 = int_to_ptr.vmem [resolvable:$false] %s600_s7 }
  0x29   : > { %s602_s18 = scalar_lea.vmem %s601_s7, 256  ;;  %p603_p9 = scmp.lt.s32.totalorder %s864_s8, %s601_s7 }
  0x2a   : > { %p598_p5 = pnand %p596_p2, %p582_p3  ;;  %p604_p4 = scmp.lt.s32.totalorder %s602_s18, %s595_s4 }
  0x2c   : > { %p599_p11 = pneg %p598_p5  ;;  %p605_p7 = por %p604_p4, %p603_p9 }
  0x2e   : > { %p606_p10 = pnand %p605_p7, %p599_p11 }
  0x30   : > { %609 = shalt.err (!%p606_p10)
}
  0x31   : > { %s761_s11 = smov 32   ;;  %s762_s19 = smov 2  }
  0x32   : > { %513 = dma.hbm_to_vmem [thread:$0]  (!%p868_p0), %s860_s6, 128, %s864_s8, %s169_s10, %s761_s11, %s761_s11, %s762_s19  }
  0x33   : > { %p210_p9 = scmp.lt.s32.totalorder %s758_s17, 3  ;;  %s910_s23 = scalar_lea.hbm %s1059_s1, %s500_s30 }
  0x34   : > { %p1069_p11 = scmp.ge.s32.totalorder %s758_s17, 1  ;;  %s194_s5 = scalar_lea.vmem [#allocation5], %s477_s29 }
  0x35   : > { %s202_s7 = sshll.u32 %s194_s5, 4  ;;  %s191_s6 = scalar_lea.sflag [#allocation6], %s851_s28  ;;  %s920_s7 = int_to_ptr.vmem [resolvable:$true] %s202_s7 }
  0x36   : > { %p914_p12 = pnand %p1069_p11, %p210_p9  ;;  %s610_s8 = scalar_lea.hbm %s910_s23, 128 }
  0x37   : > { %p611_p1 = scmp.ne.s32.totalorder %s910_s23, %s610_s8  ;;  %s615_s18 = scalar_lea.hbm %s1059_s1, 256 }
  0x38   : > { %p616_p2 = scmp.lt.u32.totalorder %s910_s23, %s1059_s1  ;;  %p617_p5 = scmp.lt.u32.totalorder %s615_s18, %s610_s8 }
  0x39   : > { %p613_p6 = pnand %p611_p1, %p582_p3  ;;  %p619_p7 = scmp.lt.u32.totalorder %s610_s8, %s910_s23 }
  0x3a   : > { %p618_p4 = por %p617_p5, %p616_p2 }
  0x3b   : > { %p614_p13 = pneg %p613_p6 }
  0x3c   : > { %p620_p10 = por %p619_p7, %p618_p4 }
  0x3e   : > { %p621_p9 = pnand %p620_p10, %p614_p13 }
  0x40   : > { %624 = shalt.err (!%p621_p9)
}
  0x41   : > { %s625_s29 = scalar_lea.vmem %s920_s7, 128  ;;  %s763_s5 = smov [#allocation5]  }
  0x42   : > { %p626_p11 = scmp.ne.s32.totalorder %s920_s7, %s625_s29  ;;  %s630_s30 = sshll.u32 %s763_s5, 4  ;;  %s631_s30 = int_to_ptr.vmem [resolvable:$false] %s630_s30 }
  0x43   : > { %s632_s10 = scalar_lea.vmem %s631_s30, 256  ;;  %p633_p8 = scmp.lt.s32.totalorder %s920_s7, %s631_s30 }
  0x44   : > { %p628_p1 = pnand %p626_p11, %p582_p3  ;;  %p634_p2 = scmp.lt.s32.totalorder %s632_s10, %s625_s29 }
  0x46   : > { %p629_p6 = pneg %p628_p1  ;;  %p635_p5 = por %p634_p2, %p633_p8 }
  0x48   : > { %p636_p4 = pnand %p635_p5, %p629_p6 }
  0x4a   : > { %639 = shalt.err (!%p636_p4)
}
  0x4b   : > { %516 = dma.hbm_to_vmem [thread:$0]  (!%p868_p0), %s910_s23, 128, %s920_s7, %s191_s6, %s761_s11, %s761_s11, %s762_s19  }
  0x4c   : > { %214 = sbr.rel (%p914_p12) target bundleno = 151 (0x97), region = 28  ;;  %s954_s8 = sand.u32 (!%p914_p12), 1, %s742_s13  }
  0x4d   : > { %s484_s18 = sshll.u32 (!%p914_p12), %s954_s8, 3  ;;  %s217_s21 = scalar_lea.sflag (!%p914_p12), [#allocation3], %s954_s8 }
  0x4e   : > { %s220_s9 = scalar_lea.vmem (!%p914_p12), [#allocation2], %s484_s18  ;;  %p1071_p8 = scmp.ne.s32.totalorder (!%p914_p12), %s1065_s24, 0 }
  0x53   : > { %721 = dma.done.wait (%p1071_p8), %s217_s21, 128  }
  0x54   : > { %723 = vsyncadd (%p1071_p8), %s217_s21, 4294967168  ;;  %s226_s28 = scalar_lea.sflag [#allocation6], %s954_s8  ;;  %s229_s11 = scalar_lea.vmem [#allocation5], %s484_s18 }
  0x55   : > { %725 = dma.done.wait (%p1071_p8), %s226_s28, 128  }
  0x56   : > { %727 = vsyncadd (%p1071_p8), %s226_s28, 4294967168  ;;  %v262_v0 = vld [vmem:[%s220_s9] sm:$0x3]  ;;  %v488_v1 = vld [vmem:[%s220_s9 + $0x2] sm:$0x3]  ;;  %s486_s24 = sshll.u32 %s954_s8, 1 }
  0x57   : > { %v489_v2 = vld [vmem:[%s220_s9 + $0x4] sm:$0x3]  ;;  %v490_v3 = vld [vmem:[%s220_s9 + $0x6] sm:$0x3]  ;;  %v269_v4 = vld [vmem:[%s229_s11] sm:$0x3] }
  0x58   : > { %v491_v5 = vld [vmem:[%s229_s11 + $0x2] sm:$0x3]  ;;  %v276_v6 = vadd.f32 %v489_v2, %v262_v0  ;;  %v492_v7 = vld [vmem:[%s229_s11 + $0x4] sm:$0x3]  ;;  %v493_v8 = vld [vmem:[%s229_s11 + $0x6] sm:$0x3]  ;;  %v277_v9 = vadd.f32 %v490_v3, %v488_v1  ;;  %v282_v10 = vmin.f32 %v262_v0, %v269_v4 }
  0x59   : > { %v286_v11 = vmin.f32 %v488_v1, %v491_v5  ;;  %v279_v12 = vadd.f32 %v492_v7, %v269_v4  ;;  %v280_v13 = vadd.f32 %v493_v8, %v491_v5  ;;  %v283_v14 = vmin.f32 %v489_v2, %v492_v7  ;;  %s261_s19 = scalar_lea.vmem [#allocation8], %s486_s24  ;;  %s496_s4 = sshll.u32 %s750_s15, 5 }
  0x5a   : > { %v285_v15 = vmin.f32 %v490_v3, %v493_v8  ;;  %v278_v16 = vmul.f32 %v277_v9, %v276_v6  ;;  %s334_s23 = sshll.u32 %s261_s19, 4  ;;  %s978_s22 = scalar_lea.hbm %s1061_s3, %s496_s4  ;;  %s971_s23 = int_to_ptr.vmem [resolvable:$true] %s334_s23 }
  0x5b   : > { %v281_v17 = vmul.f32 %v280_v13, %v279_v12  ;;  %v284_v18 = vadd.f32 %v283_v14, %v282_v10  ;;  %s306_s29 = scalar_lea.sflag [#allocation9], %s954_s8  ;;  %s640_s5 = scalar_lea.vmem %s971_s23, 32 }
  0x5c   : > { %v287_v19 = vadd.f32 %v286_v11, %v285_v15  ;;  %p641_p0 = scmp.ne.s32.totalorder %s971_s23, %s640_s5  ;;  %p1072_p3 = scmp.ne.s32.totalorder %s1066_s25, 0 }
  0x5d   : > { %v289_v21 = vadd.f32 %v281_v17, %v278_v16  ;;  %s764_s30 = smov [#allocation8]  }
  0x5e   : > { %v288_v20 = vmul.f32 %v287_v19, %v284_v18  ;;  %p642_p12 = pnand %p641_p0, %p1072_p3  ;;  %s644_s10 = sshll.u32 %s764_s30, 4  ;;  %s645_s10 = int_to_ptr.vmem [resolvable:$false] %s644_s10 }
  0x5f   : > { %s646_s18 = scalar_lea.vmem %s645_s10, 64  ;;  %p647_p7 = scmp.lt.s32.totalorder %s971_s23, %s645_s10 }
  0x60   : > { %v290_v22 = vsub.f32 %v289_v21, %v288_v20  ;;  %v291_v24 = vadd.f32 1.0, %v288_v20  ;;  %p643_p13 = pneg %p642_p12  ;;  %p648_p10 = scmp.lt.s32.totalorder %s646_s18, %s640_s5 }
  0x62   : > { %v292_v23 = vadd.f32 1.0, %v290_v22  ;;  %p649_p9 = por %p648_p10, %p647_p7 }
  0x64   : > { %576 = vrcp.f32 %v292_v23  ;;  %p650_p11 = pnand %p649_p9, %p643_p13 }
  0x6e   : > { %v577_v25 = vpop.eup %576 }
  0x6f   : > { %v294_v26 = vmul.f32 %v577_v25, %v291_v24 }
  0x71   : > { %578 = vlog2.f32 %v294_v26  ;;  %299 = vst [vmem:[%s261_s19] sm:$0x3] %v294_v26 }
  0x72   : > { %653 = shalt.err (!%p650_p11)
}
  0x73   : > { %s654_s21 = scalar_lea.hbm %s978_s22, 32  ;;  %s658_s11 = scalar_lea.hbm %s1061_s3, 64 }
  0x74   : > { %p655_p1 = scmp.ne.s32.totalorder %s978_s22, %s654_s21  ;;  %p659_p5 = scmp.lt.u32.totalorder %s978_s22, %s1061_s3 }
  0x75   : > { %p660_p4 = scmp.lt.u32.totalorder %s658_s11, %s654_s21  ;;  %p662_p0 = scmp.lt.u32.totalorder %s654_s21, %s978_s22 }
  0x76   : > { %p656_p6 = pnand %p655_p1, %p1072_p3 }
  0x77   : > { %p661_p8 = por %p660_p4, %p659_p5 }
  0x78   : > { %p657_p2 = pneg %p656_p6 }
  0x79   : > { %p663_p12 = por %p662_p0, %p661_p8 }
  0x7b   : > { %p664_p13 = pnand %p663_p12, %p657_p2 }
  0x7d   : > { %667 = shalt.err (!%p664_p13)
}
  0x7e   : > { %507 = dma.vmem_to_hbm [thread:$0]  (%p1072_p3), %s971_s23, 32, %s978_s22, %s306_s29   ;;  %v579_v27 = vpop.eup %578 }
  0x7f   : > { %s254_s6 = scalar_lea.vmem [#allocation7], %s486_s24  ;;  %v296_v28 = vmul.f32 0.6931472, %v579_v27  ;;  %s1011_s18 = scalar_lea.hbm %s1060_s2, %s496_s4 }
  0x80   : > { %s320_s5 = sshll.u32 %s254_s6, 4  ;;  %s301_s21 = scalar_lea.sflag [#allocation4], %s954_s8  ;;  %s1004_s5 = int_to_ptr.vmem [resolvable:$true] %s320_s5 }
  0x81   : > { %v297_v29 = vsub.f32 0.0, %v296_v28  ;;  %s668_s23 = scalar_lea.vmem %s1004_s5, 32  ;;  %s765_s24 = smov [#allocation7]  }
  0x82   : > { %p669_p7 = scmp.ne.s32.totalorder %s1004_s5, %s668_s23  ;;  %s672_s22 = sshll.u32 %s765_s24, 4  ;;  %s673_s22 = int_to_ptr.vmem [resolvable:$false] %s672_s22 }
  0x83   : > { %298 = vst [vmem:[%s254_s6] sm:$0x3] %v297_v29  ;;  %s674_s29 = scalar_lea.vmem %s673_s22, 64  ;;  %p675_p11 = scmp.lt.s32.totalorder %s1004_s5, %s673_s22 }
  0x84   : > { %p670_p10 = pnand %p669_p7, %p1072_p3  ;;  %p676_p1 = scmp.lt.s32.totalorder %s674_s29, %s668_s23 }
  0x86   : > { %p671_p9 = pneg %p670_p10  ;;  %p677_p6 = por %p676_p1, %p675_p11 }
  0x88   : > { %p678_p2 = pnand %p677_p6, %p671_p9 }
  0x8a   : > { %681 = shalt.err (!%p678_p2)
}
  0x8b   : > { %s682_s15 = scalar_lea.hbm %s1011_s18, 32  ;;  %s686_s9 = scalar_lea.hbm %s1060_s2, 64 }
  0x8c   : > { %p683_p5 = scmp.ne.s32.totalorder %s1011_s18, %s682_s15  ;;  %p687_p0 = scmp.lt.u32.totalorder %s1011_s18, %s1060_s2 }
  0x8d   : > { %p688_p12 = scmp.lt.u32.totalorder %s686_s9, %s682_s15  ;;  %p690_p7 = scmp.lt.u32.totalorder %s682_s15, %s1011_s18 }
  0x8e   : > { %p684_p4 = pnand %p683_p5, %p1072_p3 }
  0x8f   : > { %p689_p13 = por %p688_p12, %p687_p0 }
  0x90   : > { %p685_p8 = pneg %p684_p4 }
  0x91   : > { %p691_p10 = por %p690_p7, %p689_p13 }
  0x93   : > { %p692_p9 = pnand %p691_p10, %p685_p8 }
  0x95   : > { %695 = shalt.err (!%p692_p9)
}
  0x96   : > { %506 = dma.vmem_to_hbm [thread:$0]  (%p1072_p3), %s1004_s5, 32, %s1011_s18, %s301_s21  }
  0x97 PF: > { %s346_s19 = sand.u32 1, %s738_s12   ;;  %p1073_p11 = scmp.ne.s32.totalorder %s1067_s27, 0 }
  0x98   : > { %p1074_p1 = scmp.ge.s32.totalorder %s758_s17, 2  ;;  %s347_s7 = scalar_lea.sflag [#allocation4], %s346_s19 }
  0x9a   : > { %p518_p6 = pnand %p1074_p1, %p1073_p11 }
  0x9c   : > { %729 = dma.done.wait (!%p518_p6), %s347_s7, 32  }
  0x9d   : > { %731 = vsyncadd (!%p518_p6), %s347_s7, 4294967264  ;;  %s356_s6 = scalar_lea.sflag [#allocation9], %s346_s19 }
  0x9e   : > { %733 = dma.done.wait (!%p518_p6), %s356_s6, 32  }
  0x9f   : > { %735 = vsyncadd (!%p518_p6), %s356_s6, 4294967264  ;;  %s26_s17 = sadd.s32 1, %s758_s17   ;;  %s1075_s12 = smov %s742_s13 }
  0xa0   : > { %p23_p2 = scmp.ge.s32.totalorder %s26_s17, 4   ;;  %s1076_s13 = smov %s746_s14 }
  0xa1   : > { %s1077_s14 = smov %s842_s26  ;;  %s1078_s15 = smov %s754_s16 }
  0xa2   : > { %s1079_s16 = smov %s1081_s20  ;;  %25 = sbr.rel (!%p23_p2) target bundleno = 10 (0xa), region = 109 }
  0xa9   :  { %361 = vsyncpa [#allocation3], 1 }
  0xaa   :  { %363 = vsyncpa [#allocation3 + $0x1], 1 }
  0xab   :  { %364 = vsyncpa [#allocation6], 1 }
  0xac   :  { %366 = vsyncpa [#allocation6 + $0x1], 1 }
  0xad   :  { %367 = vsyncpa [#allocation4], 1 }
  0xae   :  { %369 = vsyncpa [#allocation4 + $0x1], 1 }
  0xaf   :  { %370 = vsyncpa [#allocation9], 1 }
  0xb0   :  { %372 = vsyncpa [#allocation9 + $0x1], 1 }

</bundles_post_ra>
